<compile_context>
chip_gen: v7x
topology: tpu7x:2x2x1
jax: 0.10.0
libtpu: 0.0.40
codegen_flags: <defaults>
</compile_context>

<pallas_src>
import jax
import jax.numpy as jnp
from jax.experimental import pallas as pl
from jax.experimental.pallas import tpu as pltpu


def pa_kernel(x_ref, w1_ref, b1_ref, w2_ref, b2_ref, out_ref):
    # x_ref / out_ref : (1, C, T_HW) tile in the image dtype (lane-dense).
    # w1_ref (Cr, C), b1_ref (Cr, 1) : VMEM-resident conv1 params (f32).
    # w2_ref (Cr,),  b2_ref (1,)     : SMEM scalars for conv2.
    x = x_ref[0].astype(jnp.float32)                        # (C, T_HW)

    # 1x1 conv #1 (C -> Cr) + bias + ReLU: channel mixing as one MXU matmul.
    p = jnp.maximum(
        jnp.dot(w1_ref[...], x, preferred_element_type=jnp.float32)
        + b1_ref[...],
        0.0)                                                # (Cr, T_HW)

    # 1x1 conv #2 (Cr -> 1) + bias + sigmoid as a VPU weighted row-sum.
    # (M=1, K=Cr<=8 would waste the MXU; scalar*vector scaled-adds are cheaper.)
    cr = p.shape[0]
    acc = w2_ref[0] * p[0:1, :] + b2_ref[0]                 # (1, T_HW)
    for r in range(1, cr):                                  # Cr is tiny & static
        acc = acc + w2_ref[r] * p[r:r + 1, :]
    y = jax.nn.sigmoid(acc)                                 # (1, T_HW), EUP

    # Per-pixel attention: broadcast the single-channel map over all channels.
    # Re-read x_ref so the final multiply stays a load-multiply-store stream.
    out_ref[0] = (x_ref[0].astype(jnp.float32) * y).astype(out_ref.dtype)


def _pick_lane_tile(hw_pad, c, itemsize, max_tile_bytes=2 << 20, max_lanes=8192):
    """Largest multiple of 128 that divides hw_pad, capped by a tile-byte budget."""
    cap = (max_tile_bytes // max(1, c * itemsize)) // 128 * 128
    cap = min(hw_pad, max_lanes, max(128, cap))
    best, t = 128, 128
    while t <= cap:
        if hw_pad % t == 0:
            best = t
        t += 128
    return best


def pa_layer(x_nchw, w1, b1, w2, b2):
    """PALayer forward.

    x_nchw : (N, C, H, W)  input in its native dtype (f32 or bf16).
    w1     : (C//8, C)     first 1x1 conv weight  (PyTorch (C//8, C, 1, 1) squeezed)
    b1     : (C//8,)       first 1x1 conv bias
    w2     : (1, C//8)     second 1x1 conv weight (PyTorch (1, C//8, 1, 1) squeezed)
    b2     : (1,)          second 1x1 conv bias
    """
    N, C, H, W = x_nchw.shape
    Cr = w1.shape[0]
    HW = H * W
    itemsize = jnp.dtype(x_nchw.dtype).itemsize

    # Native-dtype (N, C, HW) view (free reshape; NCHW is contiguous).  Pad HW
    # up to a multiple of 128 so stores stay lane-dense; no-op when already so.
    x = x_nchw.reshape(N, C, HW)
    HW_pad = ((HW + 127) // 128) * 128
    if HW_pad != HW:
        x = jnp.pad(x, ((0, 0), (0, 0), (0, HW_pad - HW)))

    T_HW = _pick_lane_tile(HW_pad, C, itemsize)
    num_t = HW_pad // T_HW

    w1m = w1.astype(jnp.float32)                            # (Cr, C)  VMEM-resident
    b1m = b1.reshape(Cr, 1).astype(jnp.float32)             # (Cr, 1)  VMEM-resident
    w2s = w2.reshape(Cr).astype(jnp.float32)                # (Cr,)    SMEM scalars
    b2s = b2.reshape(1).astype(jnp.float32)                 # (1,)     SMEM scalar

    # Explicit VMEM budget: double-buffered in/out tiles + resident weights +
    # f32 temporaries (x, p, y) + headroom.  Stays far below v7x's 64 MiB.
    tile_bytes = itemsize * C * T_HW
    temps_bytes = 4 * (C + Cr + 1) * T_HW
    vmem_limit = int(2 * 2 * tile_bytes + temps_bytes
                     + 2 * 4 * (Cr * C + Cr) + (2 << 20))
    vmem_limit = max(vmem_limit, 4 << 20)

    flops = N * (2 * Cr * C + 2 * Cr + C) * HW_pad
    bytes_accessed = 2 * N * C * HW_pad * itemsize + 4 * (Cr * C + 2 * Cr + 1)

    out = pl.pallas_call(
        pa_kernel,
        out_shape=jax.ShapeDtypeStruct((N, C, HW_pad), x_nchw.dtype),
        grid=(N, num_t),
        in_specs=[
            pl.BlockSpec((1, C, T_HW), lambda n, t: (n, 0, t)),   # x tile
            pl.BlockSpec((Cr, C),      lambda n, t: (0, 0)),      # conv1 weight
            pl.BlockSpec((Cr, 1),      lambda n, t: (0, 0)),      # conv1 bias
            pl.BlockSpec(memory_space=pltpu.MemorySpace.SMEM),    # conv2 weight
            pl.BlockSpec(memory_space=pltpu.MemorySpace.SMEM),    # conv2 bias
        ],
        out_specs=pl.BlockSpec((1, C, T_HW), lambda n, t: (n, 0, t)),
        compiler_params=pltpu.CompilerParams(
            dimension_semantics=("parallel", "parallel"),
            vmem_limit_bytes=vmem_limit),
        cost_estimate=pl.CostEstimate(
            flops=flops,
            transcendentals=N * HW_pad,                     # one sigmoid per pixel
            bytes_accessed=bytes_accessed),
    )(x, w1m, b1m, w2s, b2s)

    if HW_pad != HW:
        out = out[..., :HW]
    return out.reshape(N, C, H, W)


# ----------------------------- pure-JAX reference ----------------------------
def reference_forward(x_nchw, w1, b1, w2, b2):
    x = x_nchw.astype(jnp.float32)
    p = jax.nn.relu(jnp.einsum('nchw,dc->ndhw', x, w1) + b1.reshape(1, -1, 1, 1))
    y = jax.nn.sigmoid(jnp.einsum('ndhw,od->nohw', p, w2) + b2.reshape(1, 1, 1, 1))
    return (x * y).astype(x_nchw.dtype)


# ------------------------------------ main ------------------------------------
if __name__ == "__main__":
    # channel must be >= 8 so channel // 8 >= 1; use a small 16-channel case.
    N, C, H, W = 2, 16, 16, 16
    Cr = C // 8

    key = jax.random.PRNGKey(0)
    ks = jax.random.split(key, 5)

    def init(k, shape, scale=0.1):
        return (scale * jax.random.normal(k, shape)).astype(jnp.float32)

    w1 = init(ks[0], (Cr, C))      # Conv2d(C, C//8, 1) weight, squeezed
    b1 = init(ks[1], (Cr,))        # its bias
    w2 = init(ks[2], (1, Cr))      # Conv2d(C//8, 1, 1) weight, squeezed
    b2 = init(ks[3], (1,))         # its bias
    x = jax.random.normal(ks[4], (N, C, H, W), dtype=jnp.float32)   # NCHW like PyTorch

    out = jax.block_until_ready(pa_layer(x, w1, b1, w2, b2))
    ref = jax.block_until_ready(reference_forward(x, w1, b1, w2, b2))

    assert out.shape == (N, C, H, W)
    assert jnp.allclose(out, ref, atol=1e-5, rtol=1e-5), \
        f"max abs err = {jnp.max(jnp.abs(out - ref))}"

    print("KERNEL_OK")
</pallas_src>

<mosaic_0001>
module attributes {stable_mosaic.version = 11 : i64} {
  func.func @pa_kernel(%arg0: i32, %arg1: i32, %arg2: memref<1x16x256xf32, #tpu.memory_space<vmem>>, %arg3: memref<2x16xf32, #tpu.memory_space<vmem>>, %arg4: memref<2x1xf32, #tpu.memory_space<vmem>>, %arg5: memref<2xf32, #tpu.memory_space<smem>>, %arg6: memref<1xf32, #tpu.memory_space<smem>>, %arg7: memref<1x16x256xf32, #tpu.memory_space<vmem>>) attributes {dimension_semantics = [#tpu.dimension_semantics<parallel>, #tpu.dimension_semantics<parallel>], iteration_bounds = array<i64: 2, 1>, scalar_prefetch = 0 : i64, scratch_operands = 0 : i64, tpu.core_type = #tpu.core_type<tc>, window_params = [{transform_indices = @transform_0, window_bounds = array<i64: 1, 16, 256>}, {pipeline_mode = #tpu.pipeline_mode<synchronous>, transform_indices = @transform_1, window_bounds = array<i64: 2, 16>}, {pipeline_mode = #tpu.pipeline_mode<synchronous>, transform_indices = @transform_2, window_bounds = array<i64: 2, 1>}, {transform_indices = @transform_3, window_bounds = array<i64: 2>}, {transform_indices = @transform_4, window_bounds = array<i64: 1>}, {transform_indices = @transform_5, window_bounds = array<i64: 1, 16, 256>}]} {
    %c0 = arith.constant 0 : index
    %c0_0 = arith.constant 0 : index
    %c0_1 = arith.constant 0 : index
    %0 = vector.load %arg2[%c0, %c0_0, %c0_1] : memref<1x16x256xf32, #tpu.memory_space<vmem>>, vector<1x16x256xf32>
    %1 = vector.shape_cast %0 : vector<1x16x256xf32> to vector<16x256xf32>
    %c0_2 = arith.constant 0 : index
    %c0_3 = arith.constant 0 : index
    %2 = vector.load %arg3[%c0_2, %c0_3] : memref<2x16xf32, #tpu.memory_space<vmem>>, vector<2x16xf32>
    %cst = arith.constant dense<0.000000e+00> : vector<2x256xf32>
    %3 = tpu.matmul %2, %1, %cst {dimension_numbers = #tpu.dot_dimension_numbers<[1], [0], [0], [1], [0, 0, 1, 1], [], []>} : vector<2x16xf32>, vector<16x256xf32>, vector<2x256xf32> -> vector<2x256xf32>
    %c0_4 = arith.constant 0 : index
    %c0_5 = arith.constant 0 : index
    %4 = vector.load %arg4[%c0_4, %c0_5] : memref<2x1xf32, #tpu.memory_space<vmem>>, vector<2x1xf32>
    %5 = vector.broadcast %4 : vector<2x1xf32> to vector<2x256xf32>
    %6 = arith.addf %3, %5 : vector<2x256xf32>
    %cst_6 = arith.constant 0.000000e+00 : f32
    %7 = vector.broadcast %cst_6 : f32 to vector<2x256xf32>
    %8 = arith.maximumf %6, %7 : vector<2x256xf32>
    %c0_7 = arith.constant 0 : index
    %9 = memref.load %arg5[%c0_7] : memref<2xf32, #tpu.memory_space<smem>>
    %10 = vector.extract_strided_slice %8 {offsets = [0, 0], sizes = [1, 256], strides = [1, 1]} : vector<2x256xf32> to vector<1x256xf32>
    %11 = vector.broadcast %9 : f32 to vector<1x256xf32>
    %12 = arith.mulf %11, %10 : vector<1x256xf32>
    %c0_8 = arith.constant 0 : index
    %13 = memref.load %arg6[%c0_8] : memref<1xf32, #tpu.memory_space<smem>>
    %14 = vector.broadcast %13 : f32 to vector<1x256xf32>
    %15 = arith.addf %12, %14 : vector<1x256xf32>
    %c1 = arith.constant 1 : index
    %16 = memref.load %arg5[%c1] : memref<2xf32, #tpu.memory_space<smem>>
    %17 = vector.extract_strided_slice %8 {offsets = [1, 0], sizes = [1, 256], strides = [1, 1]} : vector<2x256xf32> to vector<1x256xf32>
    %18 = vector.broadcast %16 : f32 to vector<1x256xf32>
    %19 = arith.mulf %18, %17 : vector<1x256xf32>
    %20 = arith.addf %15, %19 : vector<1x256xf32>
    %21 = arith.negf %20 : vector<1x256xf32>
    %22 = math.exp %21 : vector<1x256xf32>
    %cst_9 = arith.constant 1.000000e+00 : f32
    %23 = vector.broadcast %cst_9 : f32 to vector<1x256xf32>
    %24 = arith.addf %23, %22 : vector<1x256xf32>
    %25 = arith.divf %23, %24 : vector<1x256xf32>
    %c0_10 = arith.constant 0 : index
    %c0_11 = arith.constant 0 : index
    %c0_12 = arith.constant 0 : index
    %26 = vector.load %arg2[%c0_10, %c0_11, %c0_12] : memref<1x16x256xf32, #tpu.memory_space<vmem>>, vector<1x16x256xf32>
    %27 = vector.shape_cast %26 : vector<1x16x256xf32> to vector<16x256xf32>
    %28 = vector.broadcast %25 : vector<1x256xf32> to vector<16x256xf32>
    %29 = arith.mulf %27, %28 : vector<16x256xf32>
    %c0_13 = arith.constant 0 : index
    %c0_14 = arith.constant 0 : index
    %c0_15 = arith.constant 0 : index
    %30 = vector.load %arg7[%c0_13, %c0_14, %c0_15] : memref<1x16x256xf32, #tpu.memory_space<vmem>>, vector<1x16x256xf32>
    %31 = vector.shape_cast %30 : vector<1x16x256xf32> to vector<16x256xf32>
    %32 = vector.shape_cast %29 : vector<16x256xf32> to vector<1x16x256xf32>
    tpu.vector_store %arg7[%c0_13, %c0_14, %c0_15], %32 {strides = array<i32>} : memref<1x16x256xf32, #tpu.memory_space<vmem>>, vector<1x16x256xf32>,
    return
  }
  func.func @transform_0(%arg0: i32, %arg1: i32) -> (i32, i32, i32) {
    %c0_i32 = arith.constant 0 : i32
    %c0_i32_0 = arith.constant 0 : i32
    return %arg0, %c0_i32, %arg1 : i32, i32, i32
  }
  func.func @transform_1(%arg0: i32, %arg1: i32) -> (i32, i32) {
    %c0_i32 = arith.constant 0 : i32
    %c0_i32_0 = arith.constant 0 : i32
    %c0_i32_1 = arith.constant 0 : i32
    return %c0_i32, %c0_i32_0 : i32, i32
  }
  func.func @transform_2(%arg0: i32, %arg1: i32) -> (i32, i32) {
    %c0_i32 = arith.constant 0 : i32
    %c0_i32_0 = arith.constant 0 : i32
    %c0_i32_1 = arith.constant 0 : i32
    return %c0_i32, %c0_i32_0 : i32, i32
  }
  func.func @transform_3(%arg0: i32, %arg1: i32) -> i32 {
    %c0_i32 = arith.constant 0 : i32
    %c0_i32_0 = arith.constant 0 : i32
    return %c0_i32 : i32
  }
  func.func @transform_4(%arg0: i32, %arg1: i32) -> i32 {
    %c0_i32 = arith.constant 0 : i32
    %c0_i32_0 = arith.constant 0 : i32
    return %c0_i32 : i32
  }
  func.func @transform_5(%arg0: i32, %arg1: i32) -> (i32, i32, i32) {
    %c0_i32 = arith.constant 0 : i32
    %c0_i32_0 = arith.constant 0 : i32
    return %arg0, %c0_i32, %arg1 : i32, i32, i32
  }
}

</mosaic_0001>

<bundles_post_ra>
// kernel: tpu_custom_call.1
= control target key start
LH: loop header
LB: loop body
LE: loop exit
PB: predicated region body
PF: predicated region fallthrough
CT: control target
= control target key end

     0   :  { %s1049_s0 = inlined_call_operand.hbm [shape: f32[2,16,256], index: 0, kind: input, shape index: {}]   ;;  %s1050_s1 = inlined_call_operand.vmem [shape: f32[2,16], index: 1, kind: input, shape index: {}]   ;;  %s1051_s2 = inlined_call_operand.vmem [shape: f32[2,1], index: 2, kind: input, shape index: {}]   ;;  %s1052_s3 = inlined_call_operand.vmem [shape: f32[2], index: 3, kind: input, shape index: {}]   ;;  %s1053_s4 = inlined_call_operand.<no memory space> [shape: f32[1], index: 4, kind: input, shape index: {}]   ;;  %s1054_s5 = inlined_call_operand.hbm [shape: f32[2,16,256], index: 5, kind: output, shape index: {}]  }
   0x1   :  { %10 = sst [smem:[#allocation2]] %s1053_s4 }
   0x2   :  { %11 = vsyncpa [#allocation4], 0 }
   0x3   :  { %13 = vsyncpa [#allocation4 + $0x1], 0 }
   0x4   :  { %14 = vsyncpa [#allocation6], 0 }
   0x5   :  { %15 = vsyncpa [#allocation5], 0 }
   0x6   :  { %17 = vsyncpa [#allocation5 + $0x1], 0  ;;  %s819_s20 = smov 0   ;;  %s821_s21 = smov 0  }
   0x7   :  { %s823_s22 = smov 0   ;;  %s825_s23 = smov 0  }
   0x8   :  { %s827_s24 = smov 0   ;;  %s829_s25 = smov 0  }
   0x9 LB: > { %s529_s4 = sadd.s32 4294967295, %s775_s25   ;;  %s530_s26 = sadd.s32 4294967294, %s775_s25   ;;  %s775_s25 = sphi %s829_s25, %s23_s25   ;;  %s771_s24 = sphi %s827_s24, %s1077_s24   ;;  %s767_s23 = sphi %s825_s23, %s1076_s23   ;;  %s763_s22 = sphi %s823_s22, %s1075_s22   ;;  %s759_s21 = sphi %s821_s21, %s1074_s21   ;;  %s755_s20 = sphi %s819_s20, %s1073_s20  }
   0xa   : > { %s44_s27 = sadd.s32 1, %s763_s22  ;;  %p51_p0 = scmp.ne.s32.totalorder %s763_s22, %s759_s21 }
   0xb   : > { %p52_p1 = scmp.eq.s32.totalorder %s775_s25, 0  ;;  %p57_p2 = scmp.ne.s32.totalorder %s759_s21, %s755_s20 }
   0xc   : > { %p857_p3 = scmp.eq.s32.totalorder %s529_s4, 0  ;;  %p167_p4 = scmp.eq.s32.totalorder %s529_s4, 1 }
   0xd   : > { %p861_p5 = por %p52_p1, %p51_p0  ;;  %p173_p6 = scmp.eq.s32.totalorder %s530_s26, 1 }
   0xe   : > { %s1059_s28 = scalar_select %p857_p3, 1, 0 }
   0xf   : > { %p867_p7 = por %p857_p3, %p57_p2  ;;  %p871_p8 = por %p167_p4, %p51_p0 }
  0x10   : > { %p875_p9 = por %p173_p6, %p57_p2  ;;  %p531_p10 = scmp.ge.s32.totalorder %s775_s25, 1 }
  0x11   : > { %s1061_s30 = scalar_select %p867_p7, 1, 0 }
  0x12   : > { %s1062_s6 = scalar_select %p871_p8, 1, 0 }
  0x13   : > { %s1063_s7 = scalar_select %p875_p9, 1, 0 }
  0x14   : > { %p180_p11 = scmp.lt.s32.totalorder %s775_s25, 3  ;;  %s199_s10 = sshll.u32 %s1052_s3, 4  ;;  %s200_s10 = int_to_ptr.vmem [resolvable:$true] %s199_s10 }
  0x15   : > { %p577_p0 = scmp.lt.s32.totalorder %s775_s25, 2  ;;  %s35_s14 = sadd.s32 1, %s771_s24 }
  0x16   : > { %p884_p12 = pnand %p531_p10, %p180_p11  ;;  %p905_p6 = scmp.ge.s32.totalorder %s35_s14, 2 }
  0x17   : > { %p894_p2 = pnand %p577_p0, %p861_p5  ;;  %s213_s16 = sand.u32 1, %s763_s22  }
  0x18   : > { %p564_p1 = pneg %p884_p12  ;;  %s644_s17 = scalar_lea.vmem %s200_s10, 16 }
  0x19   : > { %p645_p10 = scmp.ne.s32.totalorder %s200_s10, %s644_s17  ;;  %p652_p13 = scmp.lt.s32.totalorder %s200_s10, %s200_s10 }
  0x1a   : > { %p900_p4 = pnand %p564_p1, %p857_p3  ;;  %p653_p9 = scmp.lt.s32.totalorder %s644_s17, %s644_s17 }
  0x1c   : > { %p646_p11 = pneg %p900_p4  ;;  %p654_p8 = por %p653_p9, %p652_p13 }
  0x1e   : > { %p647_p5 = pnand %p646_p11, %p645_p10 }
  0x20   : > { %p648_p0 = pneg %p647_p5 }
  0x22   : > { %p655_p1 = pnand %p654_p8, %p648_p0 }
  0x24   : > { %658 = shalt.err (!%p655_p1)
}
  0x25   : > { %s777_s18 = smov [#allocation7]   ;;  %s1079_s14 = smov (%p905_p6, %s35_s14), 0 }
  0x26   : > { %567 = dma.vmem_to_smem (!%p900_p4), %s200_s10, 16, %s777_s18, [#allocation6]  }
  0x27   : > { %s534_s19 = sshll.u32 %s213_s16, 5  ;;  %s39_s4 = ssub.s32 %s771_s24, %s1079_s14 }
  0x28   : > { %p42_p9 = scmp.eq.s32.totalorder %s39_s4, 0  ;;  %s550_s26 = sshll.u32 %s771_s24, 9 }
  0x29   : > { %s924_s9 = scalar_lea.hbm %s1049_s0, %s550_s26  ;;  %s217_s13 = scalar_lea.vmem [#allocation3], %s534_s19 }
  0x2a   : > { %s226_s17 = sshll.u32 %s217_s13, 4  ;;  %s933_s15 = scalar_lea.sflag [#allocation4], %s213_s16  ;;  %s931_s17 = int_to_ptr.vmem [resolvable:$true] %s226_s17 }
  0x2b   : > { %s929_s10 = scalar_select %p42_p9, %s763_s22, %s44_s27  }
  0x2c   : > { %s659_s18 = scalar_lea.hbm %s924_s9, 512  ;;  %p661_p13 = pneg %p894_p2 }
  0x2d   : > { %p660_p8 = scmp.ne.s32.totalorder %s924_s9, %s659_s18  ;;  %s664_s19 = scalar_lea.hbm %s1049_s0, 1024 }
  0x2e   : > { %p665_p10 = scmp.lt.u32.totalorder %s924_s9, %s1049_s0  ;;  %p666_p11 = scmp.lt.u32.totalorder %s664_s19, %s659_s18 }
  0x2f   : > { %p662_p4 = pnand %p661_p13, %p660_p8  ;;  %p668_p0 = scmp.lt.u32.totalorder %s659_s18, %s924_s9 }
  0x30   : > { %p667_p5 = por %p666_p11, %p665_p10 }
  0x31   : > { %p663_p6 = pneg %p662_p4 }
  0x32   : > { %p669_p1 = por %p668_p0, %p667_p5 }
  0x34   : > { %p670_p9 = pnand %p669_p1, %p663_p6 }
  0x36   : > { %673 = shalt.err (!%p670_p9)
}
  0x37   : > { %s674_s27 = scalar_lea.vmem %s931_s17, 512  ;;  %s778_s16 = smov [#allocation3]  }
  0x38   : > { %p675_p8 = scmp.ne.s32.totalorder %s931_s17, %s674_s27  ;;  %s679_s13 = sshll.u32 %s778_s16, 4  ;;  %s680_s13 = int_to_ptr.vmem [resolvable:$false] %s679_s13 }
  0x39   : > { %s681_s4 = scalar_lea.vmem %s680_s13, 1024  ;;  %p682_p7 = scmp.lt.s32.totalorder %s931_s17, %s680_s13 }
  0x3a   : > { %p677_p4 = pnand %p675_p8, %p661_p13  ;;  %p683_p10 = scmp.lt.s32.totalorder %s681_s4, %s674_s27 }
  0x3c   : > { %p678_p3 = pneg %p677_p4  ;;  %p684_p11 = por %p683_p10, %p682_p7 }
  0x3e   : > { %p685_p5 = pnand %p684_p11, %p678_p3 }
  0x40   : > { %688 = shalt.err (!%p685_p5)
}
  0x41   : > { %s779_s18 = smov 256   ;;  %s780_s26 = smov 16  }
  0x42   : > { %571 = dma.hbm_to_vmem [thread:$0]  (!%p894_p2), %s924_s9, 512, %s931_s17, %s933_s15, %s779_s18, %s779_s18, %s780_s26  }
  0x43   : > { %238 = sbr.rel (%p884_p12) target bundleno = 355 (0x163), region = 40  ;;  %s964_s19 = sand.u32 (!%p884_p12), 1, %s759_s21  }
  0x44   : > { %s538_s29 = sshll.u32 (!%p884_p12), %s964_s19, 5  ;;  %s241_s8 = scalar_lea.sflag (!%p884_p12), [#allocation4], %s964_s19 }
  0x45   : > { %s244_s27 = scalar_lea.vmem (!%p884_p12), [#allocation3], %s538_s29  ;;  %p1068_p3 = scmp.ne.s32.totalorder (!%p884_p12), %s1061_s30, 0 }
  0x4a   : > { %742 = dma.done.wait (%p1068_p3), %s241_s8, 512  }
  0x4b   : > { %744 = vsyncadd (%p1068_p3), %s241_s8, 4294966784  ;;  %p1069_p7 = scmp.ne.s32.totalorder %s1059_s28, 0 }
  0x4d   : > { %746 = dma.done.wait (%p1069_p7), [#allocation6], 16  }
  0x4e   : > { %748 = vsyncadd (%p1069_p7), [#allocation6], 4294967280 }
  0x4f   : > { %253 = sfence }
  0x50   : > { %v978_v0 = vld [vmem:[%s244_s27 + $0x8] sm:$0xff]  ;;  %v980_v1 = vld [vmem:[%s244_s27 + $0x18] sm:$0xff]  ;;  %v278_v2 = vld [vmem:[%s244_s27] sm:$0xff]  ;;  %v781_v5 = vmov 0.0   ;;  %v782_v6 = vmov 0   ;;  %vm289_vm0 = vcmask 130048   ;;  %v398_v35 = vlaneseq }
  0x51   : > { %v552_v3 = vpack.c.bf16 %v980_v1, %v978_v0  ;;  %v280_v4 = vld [vmem:[%s244_s27 + $0x10] sm:$0xff]  ;;  %357 = vmatprep.mubr.f32.mxu0 %v781_v5  ;;  %635 = vset.pattern.permute.xlu0 %v782_v6  ;;  %v283_v7 = vld [vmem:[%s1051_s2] sm:$0x3]  ;;  %s366_s9 = sld [smem:[#allocation7]]  ;;  %s542_s17 = sld [smem:[#allocation7 + $0x1]] }
  0x52   : > { %v554_v8 = vpack.c.bf16 %v280_v4, %v278_v2  ;;  %286 = vperm.xlu0 %635, %v283_v7   ;;  %v282_v9 = vld [vmem:[%s1050_s1] sm:$0x3]  ;;  %s370_s15 = sld [smem:[#allocation2]]  ;;  %v399_v37 = vshrl.u32 %v398_v35, 7  ;;  %s551_s16 = sshll.u32 %s767_s23, 9 }
  0x53   : > { %553 = vmatprep.subr.bf16.mxu0 %v552_v3  ;;  %s275_s13 = scalar_lea.vmem [#allocation8], %s538_s29  ;;  %s996_s8 = scalar_lea.hbm %s1054_s5, %s551_s16 }
  0x54   : > { %555 = vmatpush1.bf16.msra.mxu0 %v554_v8  ;;  %v400_v38 = vsub.s32 0, %v399_v37  ;;  %s430_s4 = sshll.u32 %s275_s13, 4  ;;  %s415_s23 = scalar_lea.sflag [#allocation5], %s964_s19  ;;  %s998_s4 = int_to_ptr.vmem [resolvable:$true] %s430_s4 }
  0x55   : > { %s689_s29 = scalar_lea.vmem %s998_s4, 512  ;;  %p1070_p2 = scmp.ne.s32.totalorder %s1062_s6, 0 }
  0x56   : > { %p690_p12 = scmp.ne.s32.totalorder %s998_s4, %s689_s29  ;;  %s783_s27 = smov [#allocation8]  }
  0x57   : > { %541 = vmatmul.mubr.msk.f32.vlgmr.msra.gmra.mrb[0].mxu0 %vm289_vm0, %v282_v9  ;;  %v367_v14 = vstv %s366_s9  ;;  %v375_v15 = vstv %s542_s17  ;;  %s693_s30 = sshll.u32 %s783_s27, 4  ;;  %s694_s30 = int_to_ptr.vmem [resolvable:$false] %s693_s30 }
  0x58   : > { %v371_v18 = vstv %s370_s15  ;;  %p691_p13 = pnand %p690_p12, %p1070_p2  ;;  %s695_s11 = scalar_lea.vmem %s694_s30, 1024 }
  0x59   : > { %p696_p0 = scmp.lt.s32.totalorder %s998_s4, %s694_s30  ;;  %p697_p1 = scmp.lt.s32.totalorder %s695_s11, %s689_s29 }
  0x5a   : > { %p692_p6 = pneg %p691_p13 }
  0x5b   : > { %p698_p9 = por %p697_p1, %p696_p0 }
  0x5d   : > { %p699_p8 = pnand %p698_p9, %p692_p6 }
  0xd1   : > { %v287_v10 = vpop.permute.xlu0 %286 }
 0x12a   : > { %v359_v11 = vpop.f32.mrb[0].mxu0 }
 0x12b   : > { %v360_v12 = vadd.f32 %v359_v11, %v287_v10  ;;  %v361_v13 = vpop.f32.mrb[1].mxu0 }
 0x12c   : > { %v362_v16 = vadd.f32 %v361_v13, %v287_v10 }
 0x12d   : > { %v364_v17 = vmax.f32 %v360_v12, 0.0 }
 0x12e   : > { %v365_v19 = vmax.f32 %v362_v16, 0.0 }
 0x12f   : > { %v368_v20 = vmul.f32 %v367_v14, %v364_v17  ;;  %v376_v21 = vmul.f32 %v375_v15, %v364_v17 }
 0x130   : > { %v369_v22 = vmul.f32 %v367_v14, %v365_v19  ;;  %v377_v23 = vmul.f32 %v375_v15, %v365_v19 }
 0x131   : > { %v372_v24 = vadd.f32 %v371_v18, %v368_v20  ;;  %v380_v25 = vrot.slane %v376_v21, 1 }
 0x132   : > { %v373_v26 = vadd.f32 %v371_v18, %v369_v22  ;;  %v381_v27 = vrot.slane %v377_v23, 1 }
 0x133   : > { %v384_v28 = vadd.f32 %v380_v25, %v372_v24 }
 0x134   : > { %v385_v29 = vadd.f32 %v381_v27, %v373_v26 }
 0x135   : > { %v543_v30 = vmul.f32 -1.442695, %v384_v28 }
 0x136   : > { %v544_v31 = vmul.f32 -1.442695, %v385_v29 }
 0x137   : > { %636 = vpow2.f32 %v543_v30 }
 0x138   : > { %638 = vpow2.f32 %v544_v31 }
 0x141   : > { %v637_v32 = vpop.eup %636 }
 0x142   : > { %v639_v33 = vpop.eup %638  ;;  %v392_v34 = vadd.f32 1.0, %v637_v32 }
 0x143   : > { %v393_v36 = vadd.f32 1.0, %v639_v33 }
 0x144   : > { %640 = vrcp.f32 %v392_v34 }
 0x145   : > { %642 = vrcp.f32 %v393_v36 }
 0x14e   : > { %v641_v39 = vpop.eup %640 }
 0x14f   : > { %v643_v40 = vpop.eup %642  ;;  %v401_v41 = vrot.slane %v641_v39, %v400_v38 }
 0x150   : > { %v405_v42 = vrot.slane %v643_v40, %v400_v38 }
 0x151   : > { %v406_v43 = vmul.f32 %v401_v41, %v278_v2  ;;  %v408_v44 = vmul.f32 %v401_v41, %v280_v4 }
 0x152   : > { %v407_v45 = vmul.f32 %v405_v42, %v978_v0  ;;  %v409_v46 = vmul.f32 %v405_v42, %v980_v1 }
 0x153   : > { %410 = vst [vmem:[%s275_s13] sm:$0xff] %v406_v43  ;;  %412 = vst [vmem:[%s275_s13 + $0x10] sm:$0xff] %v408_v44 }
 0x154   : > { %411 = vst [vmem:[%s275_s13 + $0x8] sm:$0xff] %v407_v45  ;;  %413 = vst [vmem:[%s275_s13 + $0x18] sm:$0xff] %v409_v46 }
 0x155   : > { %702 = shalt.err (!%p699_p8)
}
 0x156   : > { %s703_s28 = scalar_lea.hbm %s996_s8, 512  ;;  %s707_s17 = scalar_lea.hbm %s1054_s5, 1024 }
 0x157   : > { %p704_p4 = scmp.ne.s32.totalorder %s996_s8, %s703_s28  ;;  %p708_p5 = scmp.lt.u32.totalorder %s996_s8, %s1054_s5 }
 0x158   : > { %p709_p3 = scmp.lt.u32.totalorder %s707_s17, %s703_s28  ;;  %p711_p12 = scmp.lt.u32.totalorder %s703_s28, %s996_s8 }
 0x159   : > { %p705_p10 = pnand %p704_p4, %p1070_p2 }
 0x15a   : > { %p710_p7 = por %p709_p3, %p708_p5 }
 0x15b   : > { %p706_p11 = pneg %p705_p10 }
 0x15c   : > { %p712_p13 = por %p711_p12, %p710_p7 }
 0x15e   : > { %p713_p6 = pnand %p712_p13, %p706_p11 }
 0x160   : > { %716 = shalt.err (!%p713_p6)
}
 0x161   : > { %s784_s13 = smov 256   ;;  %s785_s18 = smov 16  }
 0x162   : > { %562 = dma.vmem_to_hbm [thread:$0]  (%p1070_p2), %s998_s4, 512, %s996_s8, %s415_s23, %s784_s13, %s784_s13, %s785_s18  }
 0x163 PF: > { %s445_s26 = sand.u32 1, %s755_s20   ;;  %p1071_p0 = scmp.ne.s32.totalorder %s1063_s7, 0 }
 0x164   : > { %p1072_p1 = scmp.ge.s32.totalorder %s775_s25, 2  ;;  %s446_s29 = scalar_lea.sflag [#allocation5], %s445_s26 }
 0x166   : > { %p573_p9 = pnand %p1072_p1, %p1071_p0 }
 0x168   : > { %750 = dma.done.wait (!%p573_p9), %s446_s29, 512  }
 0x169   : > { %752 = vsyncadd (!%p573_p9), %s446_s29, 4294966784  ;;  %s23_s25 = sadd.s32 1, %s775_s25   ;;  %s1073_s20 = smov %s759_s21 }
 0x16a   : > { %p20_p8 = scmp.ge.s32.totalorder %s23_s25, 4   ;;  %s1074_s21 = smov %s763_s22 }
 0x16b   : > { %s1075_s22 = smov %s929_s10  ;;  %s1076_s23 = smov %s771_s24 }
 0x16c   : > { %s1077_s24 = smov %s1079_s14  ;;  %22 = sbr.rel (!%p20_p8) target bundleno = 9 (0x9), region = 90 }
 0x173   :  { %451 = vsyncpa [#allocation4], 1 }
 0x174   :  { %453 = vsyncpa [#allocation4 + $0x1], 1 }
 0x175   :  { %454 = vsyncpa [#allocation5], 1 }
 0x176   :  { %456 = vsyncpa [#allocation5 + $0x1], 1 }
 0x177   :  { %457 = vsyncpa [#allocation6], 1 }
 0x178   :  { %459 = vsyncpa [#allocation6 + $0x1], 1 }

</bundles_post_ra>
